<compile_context>
chip_gen: v7x
topology: tpu7x:2x2x1
jax: 0.10.0
libtpu: 0.0.40
codegen_flags: <defaults>
</compile_context>

<pallas_src>
import jax
import jax.numpy as jnp
from jax.experimental import pallas as pl
from jax.experimental.pallas import tpu as pltpu

_LANES = 512         # slab lane width (multiple of 128 -> unmasked vst, lane-dense output)
_MAX_ROW_TILE = 512  # 512 rows x 512 lanes x 4 B = 1 MiB per array per grid step


def _bce_kernel(x_ref, w_ref, out_ref):
    """Elementwise out = -w * logsigmoid(x) on a (row_tile, _LANES) f32 tile."""
    x = x_ref[...]
    # numerically stable log-sigmoid: min(x, 0) - log1p(exp(-|x|))
    log_sig = jnp.minimum(x, 0.0) - jnp.log1p(jnp.exp(-jnp.abs(x)))
    out_ref[...] = -w_ref[...] * log_sig


def _slab_geometry(total):
    """Pick (rows, row_tile, grid) with rows = grid * row_tile and row_tile % 8 == 0."""
    rows_needed = -(-total // _LANES)                          # ceil(total / lanes)
    row_tile = min(_MAX_ROW_TILE, ((rows_needed + 7) // 8) * 8)
    grid = -(-rows_needed // row_tile)
    return grid * row_tile, row_tile, grid


def _to_slab(flat, rows):
    padded = rows * _LANES
    flat = jnp.pad(flat, (0, padded - flat.shape[0]))
    return flat.reshape(rows, _LANES)


def binary_cross_entropy_loss(logits, pos_targets, class_weights, *, num_neighbors, key):
    """
    logits:        (B, S, 2*num_neighbors) float  -- scores for pos + neg neighbors
    pos_targets:   (B, S, num_neighbors)   int32  -- positive vocab ids
    class_weights: (V,)                    float32
    Returns per-element losses of shape (B, S * 2*num_neighbors), float32.
    """
    B, S, C = logits.shape
    assert C == 2 * num_neighbors
    V = class_weights.shape[0]

    # _neg_samples: the int-vocab ctor branch implies uniform class weights; draw
    # negatives uniformly over the vocabulary.
    # TODO(synk): torch.multinomial(samp_prob, replacement=False) (weighted sampling
    # without replacement) is not reproduced; the int-vocab ctor never defines
    # samp_prob, so uniform sampling with replacement is used here.
    neg_targets = jax.random.randint(key, (B, S, num_neighbors), 0, V, dtype=jnp.int32)
    targets = jnp.concatenate([pos_targets.astype(jnp.int32), neg_targets], axis=2)

    N = S * C
    total = B * N
    logits_flat = logits.reshape(total).astype(jnp.float32)
    targets_flat = targets.reshape(total)
    # Class-weight gather in the wrapper with a plain XLA gather
    # (out-of-range target ids clamp, matching jnp.take's jit behavior).
    w_flat = jnp.take(class_weights.astype(jnp.float32), targets_flat, axis=0)

    rows, row_tile, grid = _slab_geometry(total)
    x_slab = _to_slab(logits_flat, rows)
    w_slab = _to_slab(w_flat, rows)

    tile_spec = pl.BlockSpec((row_tile, _LANES), lambda i: (i, 0))
    cost = pl.CostEstimate(
        flops=5 * rows * _LANES,            # min, abs, neg, mul, sub
        transcendentals=2 * rows * _LANES,  # exp + log1p
        bytes_accessed=3 * 4 * rows * _LANES,
    )

    out_slab = pl.pallas_call(
        _bce_kernel,
        out_shape=jax.ShapeDtypeStruct((rows, _LANES), jnp.float32),
        grid=(grid,),
        in_specs=[tile_spec, tile_spec],
        out_specs=tile_spec,
        compiler_params=pltpu.CompilerParams(
            dimension_semantics=("parallel",),
        ),
        cost_estimate=cost,
    )(x_slab, w_slab)

    return out_slab.reshape(-1)[:total].reshape(B, N)


if __name__ == "__main__":
    B, S, K, V = 2, 8, 10, 128   # batch, seq_length, num_neighbors, vocab size

    key = jax.random.PRNGKey(0)
    k_logits, k_pos, k_neg = jax.random.split(key, 3)

    logits = jax.random.normal(k_logits, (B, S, 2 * K), dtype=jnp.float32)
    pos_targets = jax.random.randint(k_pos, (B, S, K), 0, V, dtype=jnp.int32)
    # __init__ with an int uni_prob -> class_weights = ones(vocab)
    class_weights = jnp.ones((V,), dtype=jnp.float32)

    out = binary_cross_entropy_loss(
        logits, pos_targets, class_weights, num_neighbors=K, key=k_neg
    )
    jax.block_until_ready(out)
    assert out.shape == (B, S * 2 * K) and out.dtype == jnp.float32

    # Pure-JAX reference (same negative samples: identical key/shape/dtype draw).
    neg_ref = jax.random.randint(k_neg, (B, S, K), 0, V, dtype=jnp.int32)
    tgt_ref = jnp.concatenate([pos_targets, neg_ref], axis=2).reshape(B, -1)
    x_ref = logits.reshape(B, -1).astype(jnp.float32)
    ref = -class_weights[tgt_ref] * jax.nn.log_sigmoid(x_ref)
    assert jnp.allclose(out, ref, atol=1e-5, rtol=1e-5)

    print("KERNEL_OK")
</pallas_src>

<mosaic_0001>
module attributes {stable_mosaic.version = 11 : i64} {
  func.func @_bce_kernel(%arg0: i32, %arg1: memref<8x512xf32, #tpu.memory_space<vmem>>, %arg2: memref<8x512xf32, #tpu.memory_space<vmem>>, %arg3: memref<8x512xf32, #tpu.memory_space<vmem>>) attributes {dimension_semantics = [#tpu.dimension_semantics<parallel>], iteration_bounds = array<i64: 1>, scalar_prefetch = 0 : i64, scratch_operands = 0 : i64, tpu.core_type = #tpu.core_type<tc>, window_params = [{transform_indices = @transform_0, window_bounds = array<i64: 8, 512>}, {transform_indices = @transform_1, window_bounds = array<i64: 8, 512>}, {transform_indices = @transform_2, window_bounds = array<i64: 8, 512>}]} {
    %c0 = arith.constant 0 : index
    %c0_0 = arith.constant 0 : index
    %0 = vector.load %arg1[%c0, %c0_0] : memref<8x512xf32, #tpu.memory_space<vmem>>, vector<8x512xf32>
    %cst = arith.constant 0.000000e+00 : f32
    %1 = vector.broadcast %cst : f32 to vector<8x512xf32>
    %2 = arith.minimumf %0, %1 : vector<8x512xf32>
    %3 = math.absf %0 : vector<8x512xf32>
    %cst_1 = arith.constant 0.000000e+00 : f32
    %4 = vector.broadcast %cst_1 : f32 to vector<8x512xf32>
    %5 = arith.subf %4, %3 : vector<8x512xf32>
    %6 = math.exp %5 : vector<8x512xf32>
    %7 = math.log1p %6 : vector<8x512xf32>
    %8 = arith.subf %2, %7 : vector<8x512xf32>
    %c0_2 = arith.constant 0 : index
    %c0_3 = arith.constant 0 : index
    %9 = vector.load %arg2[%c0_2, %c0_3] : memref<8x512xf32, #tpu.memory_space<vmem>>, vector<8x512xf32>
    %cst_4 = arith.constant 0.000000e+00 : f32
    %10 = vector.broadcast %cst_4 : f32 to vector<8x512xf32>
    %11 = arith.subf %10, %9 : vector<8x512xf32>
    %12 = arith.mulf %11, %8 : vector<8x512xf32>
    %c0_5 = arith.constant 0 : index
    %c0_6 = arith.constant 0 : index
    %13 = vector.load %arg3[%c0_5, %c0_6] : memref<8x512xf32, #tpu.memory_space<vmem>>, vector<8x512xf32>
    tpu.vector_store %arg3[%c0_5, %c0_6], %12 {strides = array<i32>} : memref<8x512xf32, #tpu.memory_space<vmem>>, vector<8x512xf32>,
    return
  }
  func.func @transform_0(%arg0: i32) -> (i32, i32) {
    %c0_i32 = arith.constant 0 : i32
    %c0_i32_0 = arith.constant 0 : i32
    return %arg0, %c0_i32 : i32, i32
  }
  func.func @transform_1(%arg0: i32) -> (i32, i32) {
    %c0_i32 = arith.constant 0 : i32
    %c0_i32_0 = arith.constant 0 : i32
    return %arg0, %c0_i32 : i32, i32
  }
  func.func @transform_2(%arg0: i32) -> (i32, i32) {
    %c0_i32 = arith.constant 0 : i32
    %c0_i32_0 = arith.constant 0 : i32
    return %arg0, %c0_i32 : i32, i32
  }
}

</mosaic_0001>

<bundles_post_ra>
// kernel: tpu_custom_call.1
= control target key start
LH: loop header
LB: loop body
LE: loop exit
PB: predicated region body
PF: predicated region fallthrough
CT: control target
= control target key end

     0   :  { %7 = vsyncpa [#allocation3], 0  ;;  %s305_s0 = inlined_call_operand.hbm [shape: f32[8,512], index: 0, kind: input, shape index: {}]   ;;  %s306_s1 = inlined_call_operand.hbm [shape: f32[8,512], index: 1, kind: input, shape index: {}]   ;;  %s307_s2 = inlined_call_operand.hbm [shape: f32[8,512], index: 2, kind: output, shape index: {}]  }
   0x1   :  { %8 = vsyncpa [#allocation6], 0 }
   0x2   :  { %9 = vsyncpa [#allocation4], 0  ;;  %s223_s9 = smov [#allocation2]   ;;  %s224_s11 = smov [#allocation5]  }
   0x3   :  { %s16_s10 = sshll.u32 %s223_s9, 4  ;;  %s26_s12 = sshll.u32 %s224_s11, 4  ;;  %s17_s10 = int_to_ptr.vmem [resolvable:$true] %s16_s10  ;;  %s27_s12 = int_to_ptr.vmem [resolvable:$true] %s26_s12 }
   0x4   :  { %s151_s15 = scalar_lea.hbm %s305_s0, 512 }
   0x5   :  { %p152_p0 = scmp.ne.s32.totalorder %s305_s0, %s151_s15  ;;  %p155_p1 = scmp.lt.u32.totalorder %s151_s15, %s305_s0 }
   0x7   :  { %p157_p2 = pnand %p155_p1, %p152_p0 }
   0x9   :  { %160 = shalt.err (!%p157_p2)
}
   0xa   :  { %s161_s20 = scalar_lea.vmem %s17_s10, 512  ;;  %p166_p4 = scmp.lt.s32.totalorder %s17_s10, %s17_s10 }
   0xb   :  { %p162_p3 = scmp.ne.s32.totalorder %s17_s10, %s161_s20  ;;  %p167_p5 = scmp.lt.s32.totalorder %s161_s20, %s161_s20 }
   0xd   :  { %p168_p6 = por %p167_p5, %p166_p4 }
   0xf   :  { %p169_p7 = pnand %p168_p6, %p162_p3 }
  0x11   :  { %172 = shalt.err (!%p169_p7)
}
  0x12   :  { %19 = dma.hbm_to_vmem [thread:$0]  %s305_s0, 512, %s17_s10, [#allocation3]  }
  0x13   :  { %s173_s25 = scalar_lea.hbm %s306_s1, 512 }
  0x14   :  { %p174_p8 = scmp.ne.s32.totalorder %s306_s1, %s173_s25  ;;  %p177_p9 = scmp.lt.u32.totalorder %s173_s25, %s306_s1 }
  0x16   :  { %p179_p10 = pnand %p177_p9, %p174_p8 }
  0x18   :  { %182 = shalt.err (!%p179_p10)
}
  0x19   :  { %s183_s30 = scalar_lea.vmem %s27_s12, 512  ;;  %p188_p12 = scmp.lt.s32.totalorder %s27_s12, %s27_s12 }
  0x1a   :  { %p184_p11 = scmp.ne.s32.totalorder %s27_s12, %s183_s30  ;;  %p189_p13 = scmp.lt.s32.totalorder %s183_s30, %s183_s30 }
  0x1c   :  { %p190_p0 = por %p189_p13, %p188_p12 }
  0x1e   :  { %p191_p1 = pnand %p190_p0, %p184_p11 }
  0x20   :  { %194 = shalt.err (!%p191_p1)
}
  0x21   :  { %29 = dma.hbm_to_vmem [thread:$0]  %s306_s1, 512, %s27_s12, [#allocation6]  }
  0x22   :  { %217 = dma.done.wait [#allocation3], 512  }
  0x23   :  { %218 = vsyncadd [#allocation3], 4294966784 }
  0x24   :  { %219 = dma.done.wait [#allocation6], 512  }
  0x25   :  { %220 = vsyncadd [#allocation6], 4294966784  ;;  %v265_v0 = vld [vmem:[#allocation2] sm:$0xff]  ;;  %v267_v1 = vld [vmem:[#allocation2 + $0x8] sm:$0xff]  ;;  %s225_s1 = smov [#allocation7]  }
  0x26   :  { %v44_v2 = vand.u32 2147483647, %v265_v0  ;;  %v45_v3 = vand.u32 2147483647, %v267_v1  ;;  %v271_v4 = vld [vmem:[#allocation2 + $0x10] sm:$0xff]  ;;  %v273_v5 = vld [vmem:[#allocation2 + $0x18] sm:$0xff] }
  0x27   :  { %v46_v7 = vand.u32 2147483647, %v271_v4  ;;  %v47_v9 = vand.u32 2147483647, %v273_v5  ;;  %v100_v31 = vld [vmem:[#allocation5] sm:$0xff]  ;;  %v40_v35 = vmin.f32 %v265_v0, 0.0 }
  0x28   :  { %v48_v6 = vsub.f32 0.0, %v44_v2  ;;  %v49_v8 = vsub.f32 0.0, %v45_v3  ;;  %v101_v37 = vld [vmem:[#allocation5 + $0x8] sm:$0xff]  ;;  %v104_v41 = vsub.f32 0.0, %v100_v31  ;;  %v102_v43 = vld [vmem:[#allocation5 + $0x10] sm:$0xff]  ;;  %v41_v47 = vmin.f32 %v267_v1, 0.0 }
  0x29   :  { %v50_v11 = vsub.f32 0.0, %v46_v7  ;;  %v51_v13 = vsub.f32 0.0, %v47_v9  ;;  %v105_v52 = vsub.f32 0.0, %v101_v37  ;;  %v42_v53 = vmin.f32 %v271_v4, 0.0  ;;  %v103_v58 = vld [vmem:[#allocation5 + $0x18] sm:$0xff]  ;;  %s122_s4 = sshll.u32 %s225_s1, 4  ;;  %s123_s4 = int_to_ptr.vmem [resolvable:$true] %s122_s4 }
  0x2a   :  { %v52_v10 = vmul.f32 1.442695, %v48_v6  ;;  %v54_v12 = vmul.f32 1.442695, %v49_v8  ;;  %v106_v56 = vsub.f32 0.0, %v102_v43  ;;  %v43_v62 = vmin.f32 %v273_v5, 0.0  ;;  %p200_p3 = scmp.lt.s32.totalorder %s123_s4, %s123_s4 }
  0x2b   :  { %v56_v14 = vmul.f32 1.442695, %v50_v11  ;;  %v58_v15 = vmul.f32 1.442695, %v51_v13  ;;  %v107_v4 = vsub.f32 0.0, %v103_v58  ;;  %s195_s5 = scalar_lea.vmem %s123_s4, 512 }
  0x2c   :  { %135 = vpow2.f32 %v52_v10  ;;  %p196_p2 = scmp.ne.s32.totalorder %s123_s4, %s195_s5  ;;  %p201_p4 = scmp.lt.s32.totalorder %s195_s5, %s195_s5 }
  0x2d   :  { %137 = vpow2.f32 %v54_v12 }
  0x2e   :  { %139 = vpow2.f32 %v56_v14  ;;  %p202_p5 = por %p201_p4, %p200_p3 }
  0x2f   :  { %141 = vpow2.f32 %v58_v15 }
  0x30   :  { %p203_p6 = pnand %p202_p5, %p196_p2 }
  0x36   :  { %v136_v16 = vpop.eup %135 }
  0x37   :  { %v138_v17 = vpop.eup %137  ;;  %v60_v18 = vadd.f32 1.0, %v136_v16  ;;  %v63_v23 = vmul.f32 -0.5, %v136_v16  ;;  %v66_v29 = vand.u32 2147483647, %v136_v16 }
  0x38   :  { %v140_v19 = vpop.eup %139  ;;  %v69_v20 = vadd.f32 1.0, %v138_v17  ;;  %v72_v24 = vmul.f32 -0.5, %v138_v17  ;;  %v75_v32 = vand.u32 2147483647, %v138_v17 }
  0x39   :  { %v142_v21 = vpop.eup %141  ;;  %143 = vlog2.f32 %v60_v18  ;;  %v78_v22 = vadd.f32 1.0, %v140_v19  ;;  %v81_v26 = vmul.f32 -0.5, %v140_v19  ;;  %v64_v27 = vadd.f32 1.0, %v63_v23 }
  0x3a   :  { %145 = vlog2.f32 %v69_v20  ;;  %v87_v25 = vadd.f32 1.0, %v142_v21  ;;  %v90_v28 = vmul.f32 -0.5, %v142_v21  ;;  %v73_v30 = vadd.f32 1.0, %v72_v24 }
  0x3b   :  { %147 = vlog2.f32 %v78_v22  ;;  %v82_v33 = vadd.f32 1.0, %v81_v26  ;;  %v84_v34 = vand.u32 2147483647, %v140_v19  ;;  %v65_v36 = vmul.f32 %v136_v16, %v64_v27 }
  0x3c   :  { %149 = vlog2.f32 %v87_v25  ;;  %v91_v38 = vadd.f32 1.0, %v90_v28  ;;  %vm278_vm0 = vcmp.lt.f32.partialorder %v66_v29, 0.0004427343  ;;  %v74_v42 = vmul.f32 %v138_v17, %v73_v30 }
  0x3d   :  { %v93_v44 = vand.u32 2147483647, %v142_v21  ;;  %vm283_vm1 = vcmp.lt.f32.partialorder %v75_v32, 0.0004427343  ;;  %v83_v49 = vmul.f32 %v140_v19, %v82_v33  ;;  %vm85_vm2 = vcmp.lt.f32.partialorder %v84_v34, 0.0004427343 }
  0x3e   :  { %v92_v57 = vmul.f32 %v142_v21, %v91_v38 }
  0x3f   :  { %vm94_vm3 = vcmp.lt.f32.partialorder %v93_v44, 0.0004427343 }
  0x43   :  { %v144_v39 = vpop.eup %143 }
  0x44   :  { %v146_v45 = vpop.eup %145  ;;  %v62_v46 = vmul.f32 0.6931472, %v144_v39 }
  0x45   :  { %v148_v50 = vpop.eup %147  ;;  %v71_v51 = vmul.f32 0.6931472, %v146_v45 }
  0x46   :  { %v68_v54 = vsel %vm278_vm0, %v65_v36, %v62_v46  ;;  %v80_v55 = vmul.f32 0.6931472, %v148_v50  ;;  %v150_v59 = vpop.eup %149 }
  0x47   :  { %v96_v60 = vsub.f32 %v40_v35, %v68_v54  ;;  %v77_v61 = vsel %vm283_vm1, %v74_v42, %v71_v51  ;;  %v89_v1 = vmul.f32 0.6931472, %v150_v59 }
  0x48   :  { %v97_v63 = vsub.f32 %v41_v47, %v77_v61  ;;  %v86_v0 = vsel %vm85_vm2, %v83_v49, %v80_v55 }
  0x49   :  { %v108_v2 = vmul.f32 %v104_v41, %v96_v60  ;;  %v98_v3 = vsub.f32 %v42_v53, %v86_v0  ;;  %v95_v7 = vsel %vm94_vm3, %v92_v57, %v89_v1 }
  0x4a   :  { %v109_v6 = vmul.f32 %v105_v52, %v97_v63  ;;  %v99_v9 = vsub.f32 %v43_v62, %v95_v7 }
  0x4b   :  { %112 = vst [vmem:[#allocation7] sm:$0xff] %v108_v2  ;;  %v110_v8 = vmul.f32 %v106_v56, %v98_v3 }
  0x4c   :  { %113 = vst [vmem:[#allocation7 + $0x8] sm:$0xff] %v109_v6  ;;  %v111_v10 = vmul.f32 %v107_v4, %v99_v9 }
  0x4d   :  { %114 = vst [vmem:[#allocation7 + $0x10] sm:$0xff] %v110_v8 }
  0x4e   :  { %115 = vst [vmem:[#allocation7 + $0x18] sm:$0xff] %v111_v10 }
  0x4f   :  { %206 = shalt.err (!%p203_p6)
}
  0x50   :  { %s207_s8 = scalar_lea.hbm %s307_s2, 512 }
  0x51   :  { %p208_p7 = scmp.ne.s32.totalorder %s307_s2, %s207_s8  ;;  %p211_p8 = scmp.lt.u32.totalorder %s207_s8, %s307_s2 }
  0x53   :  { %p213_p9 = pnand %p211_p8, %p208_p7 }
  0x55   :  { %216 = shalt.err (!%p213_p9)
}
  0x56   :  { %125 = dma.vmem_to_hbm [thread:$0]  %s123_s4, 512, %s307_s2, [#allocation4]  }
  0x57   :  { %221 = dma.done.wait [#allocation4], 512  }
  0x58   :  { %222 = vsyncadd [#allocation4], 4294966784 }
  0x59   :  { %129 = vsyncpa [#allocation3], 1 }
  0x5a   :  { %130 = vsyncpa [#allocation6], 1 }
  0x5b   :  { %131 = vsyncpa [#allocation4], 1 }

</bundles_post_ra>
